<compile_context>
chip_gen: v5e
topology: v5e:2x2
jax: 0.10.0
libtpu: 0.0.40
codegen_flags: <defaults>
</compile_context>

<pallas_src>
import functools

import jax
import jax.numpy as jnp
from jax.experimental import pallas as pl
from jax.experimental.pallas import tpu as pltpu


# ----------------------------------------------------------------------------
# Fused kernel: QKV proj + SiLU + depthwise-separable conv + MHA + out proj
# ----------------------------------------------------------------------------
def _titan_kernel(x_ref, wqkv_ref, bqkv_ref, dw_ref, db_ref,
                  qpw_ref, qpb_ref, kpw_ref, kpb_ref, vpw_ref, vpb_ref,
                  wo_ref, bo_ref, o_ref, *, num_heads, head_dim, scale):
    S = x_ref.shape[0]
    C = num_heads * head_dim

    # ---- fused q|k|v projection + SiLU (single MXU matmul, N = 3C) --------
    z = jnp.dot(x_ref[...], wqkv_ref[...], preferred_element_type=jnp.float32)
    z = z + bqkv_ref[...]
    z = z * jax.nn.sigmoid(z)                                   # SiLU, (S, 3C)

    # ---- depthwise conv1d over the seq (sublane) axis, k=3, pad=1 ---------
    # Rolls ride the XLU slot; boundary masking uses a small (S, 1) iota
    # instead of a full-block iota.
    row = jax.lax.broadcasted_iota(jnp.int32, (S, 1), 0)
    z_prev = jnp.where(row >= 1, pltpu.roll(z, shift=1, axis=0), 0.0)
    z_next = jnp.where(row <= S - 2, pltpu.roll(z, shift=S - 1, axis=0), 0.0)
    y = (z_prev * dw_ref[0:1, :] + z * dw_ref[1:2, :]
         + z_next * dw_ref[2:3, :] + db_ref[...])               # (S, 3C)

    # ---- pointwise (1x1) convs, one per projection (lane-aligned slices) --
    q = jnp.dot(y[:, 0:C], qpw_ref[...],
                preferred_element_type=jnp.float32) + qpb_ref[...]
    k = jnp.dot(y[:, C:2 * C], kpw_ref[...],
                preferred_element_type=jnp.float32) + kpb_ref[...]
    v = jnp.dot(y[:, 2 * C:3 * C], vpw_ref[...],
                preferred_element_type=jnp.float32) + vpb_ref[...]

    # Fold the attention scale into q: O(S*D) instead of scaling S*S scores.
    q = q * scale

    # ---- per-head attention with fused output projection ------------------
    # TODO(synk): attention-prob dropout and the mask!=None branch are omitted
    # (inference semantics with mask=None, matching the module in eval mode).
    acc = jnp.zeros((S, o_ref.shape[-1]), jnp.float32)
    for h in range(num_heads):
        lo = h * head_dim
        hi = lo + head_dim
        qh = q[:, lo:hi]
        kh = k[:, lo:hi]
        vh = v[:, lo:hi]
        # q @ k^T without materializing the transpose (MXU consumes it natively).
        s = jax.lax.dot_general(qh, kh, (((1,), (1,)), ((), ())),
                                preferred_element_type=jnp.float32)
        m = jnp.max(s, axis=-1, keepdims=True)
        p = jnp.exp(s - m)
        l = jnp.sum(p, axis=-1, keepdims=True)
        oh = jnp.dot(p, vh, preferred_element_type=jnp.float32)
        oh = oh * pl.reciprocal(l, approx=True)                 # EUP, ~free
        # out_proj fused: concat_h(o_h) @ Wo == sum_h o_h @ Wo[h*D:(h+1)*D]
        acc = acc + jnp.dot(oh, wo_ref[lo:hi, :],
                            preferred_element_type=jnp.float32)
    o_ref[...] = acc + bo_ref[...]


# ----------------------------------------------------------------------------
# Wrapper
# ----------------------------------------------------------------------------
def titan_attention_forward(x, p, *, num_heads, head_dim):
    """Pallas implementation of TitanAttention.forward (eval mode, mask=None)."""
    B, S, dim = x.shape
    scale = head_dim ** (-0.5)

    # Pre-fuse projection weights / depthwise params (depthwise conv is
    # per-channel, so concatenating along channels is exactly equivalent).
    wqkv = jnp.concatenate([p["wq"], p["wk"], p["wv"]], axis=1)      # (dim, 3C)
    bqkv = jnp.concatenate([p["bq"], p["bk"], p["bv"]], axis=1)      # (1, 3C)
    dw = jnp.concatenate([p["q_dw"], p["k_dw"], p["v_dw"]], axis=1)  # (3, 3C)
    db = jnp.concatenate([p["q_db"], p["k_db"], p["v_db"]], axis=1)  # (1, 3C)

    kernel = functools.partial(_titan_kernel, num_heads=num_heads,
                               head_dim=head_dim, scale=scale)

    def full2d(a):  # whole-array block, same block every grid step (no re-DMA)
        return pl.BlockSpec(a.shape, lambda b: (0, 0))

    return pl.pallas_call(
        kernel,
        out_shape=jax.ShapeDtypeStruct((B, S, dim), jnp.float32),
        grid=(B,),
        in_specs=[pl.BlockSpec((None, S, dim), lambda b: (b, 0, 0)),
                  full2d(wqkv), full2d(bqkv), full2d(dw), full2d(db),
                  full2d(p["q_pw"]), full2d(p["q_pb"]),
                  full2d(p["k_pw"]), full2d(p["k_pb"]),
                  full2d(p["v_pw"]), full2d(p["v_pb"]),
                  full2d(p["wo"]), full2d(p["bo"])],
        out_specs=pl.BlockSpec((None, S, dim), lambda b: (b, 0, 0)),
        compiler_params=pltpu.CompilerParams(
            dimension_semantics=("parallel",)),
    )(x, wqkv, bqkv, dw, db,
      p["q_pw"], p["q_pb"], p["k_pw"], p["k_pb"], p["v_pw"], p["v_pb"],
      p["wo"], p["bo"])


# ----------------------------------------------------------------------------
# Pure-JAX reference (for correctness check)
# ----------------------------------------------------------------------------
def _ref_forward(x, p, num_heads, head_dim):
    B, S, dim = x.shape
    C = num_heads * head_dim
    scale = head_dim ** (-0.5)
    silu = lambda z: z * jax.nn.sigmoid(z)

    def dsconv_ref(t, dw, db, pw, pb):
        tp = jnp.pad(t, ((0, 0), (1, 1), (0, 0)))
        y = (tp[:, :-2] * dw[0] + tp[:, 1:-1] * dw[1] + tp[:, 2:] * dw[2] + db)
        return y @ pw + pb

    q = dsconv_ref(silu(x @ p["wq"] + p["bq"]),
                   p["q_dw"], p["q_db"], p["q_pw"], p["q_pb"])
    k = dsconv_ref(silu(x @ p["wk"] + p["bk"]),
                   p["k_dw"], p["k_db"], p["k_pw"], p["k_pb"])
    v = dsconv_ref(silu(x @ p["wv"] + p["bv"]),
                   p["v_dw"], p["v_db"], p["v_pw"], p["v_pb"])

    def split_heads(t):
        return t.reshape(B, S, num_heads, head_dim).transpose(0, 2, 1, 3)

    qh, kh, vh = split_heads(q), split_heads(k), split_heads(v)
    attn = jnp.einsum("bhqd,bhkd->bhqk", qh, kh) * scale
    attn = jax.nn.softmax(attn, axis=-1)
    out = jnp.einsum("bhqk,bhkd->bhqd", attn, vh)
    out = out.transpose(0, 2, 1, 3).reshape(B, S, C)
    return out @ p["wo"] + p["bo"]


# ----------------------------------------------------------------------------
# Deterministic parameter init (PyTorch-layer-equivalent layout)
# ----------------------------------------------------------------------------
def init_params(key, dim, num_heads, head_dim):
    C = num_heads * head_dim
    ks = jax.random.split(key, 20)

    def w(k, shape, s=0.05):
        return (s * jax.random.normal(k, shape)).astype(jnp.float32)

    return dict(
        wq=w(ks[0], (dim, C)), bq=w(ks[1], (1, C)),
        wk=w(ks[2], (dim, C)), bk=w(ks[3], (1, C)),
        wv=w(ks[4], (dim, C)), bv=w(ks[5], (1, C)),
        q_dw=w(ks[6], (3, C)), q_db=w(ks[7], (1, C)),
        q_pw=w(ks[8], (C, C)), q_pb=w(ks[9], (1, C)),
        k_dw=w(ks[10], (3, C)), k_db=w(ks[11], (1, C)),
        k_pw=w(ks[12], (C, C)), k_pb=w(ks[13], (1, C)),
        v_dw=w(ks[14], (3, C)), v_db=w(ks[15], (1, C)),
        v_pw=w(ks[16], (C, C)), v_pb=w(ks[17], (1, C)),
        wo=w(ks[18], (C, dim)), bo=w(ks[19], (1, dim)),
    )


if __name__ == "__main__":
    # Small shapes consistent with the module: dim=32, num_heads=4, head_dim=32
    B, S, dim = 2, 8, 32
    num_heads, head_dim = 4, 32

    key = jax.random.PRNGKey(0)
    k_x, k_p = jax.random.split(key)
    x = jax.random.normal(k_x, (B, S, dim), dtype=jnp.float32)
    params = init_params(k_p, dim, num_heads, head_dim)

    forward = jax.jit(titan_attention_forward,
                      static_argnames=("num_heads", "head_dim"))
    out = forward(x, params, num_heads=num_heads, head_dim=head_dim)
    out = jax.block_until_ready(out)

    ref = _ref_forward(x, params, num_heads, head_dim)
    assert out.shape == (B, S, dim)
    assert jnp.allclose(out, ref, rtol=2e-3, atol=2e-3), "mismatch vs reference"

    print("KERNEL_OK")
</pallas_src>

<mosaic_0001>
module attributes {stable_mosaic.version = 11 : i64} {
  func.func @_titan_kernel(%arg0: i32, %arg1: memref<1x8x32xf32, #tpu.memory_space<vmem>>, %arg2: memref<32x384xf32, #tpu.memory_space<vmem>>, %arg3: memref<1x384xf32, #tpu.memory_space<vmem>>, %arg4: memref<3x384xf32, #tpu.memory_space<vmem>>, %arg5: memref<1x384xf32, #tpu.memory_space<vmem>>, %arg6: memref<128x128xf32, #tpu.memory_space<vmem>>, %arg7: memref<1x128xf32, #tpu.memory_space<vmem>>, %arg8: memref<128x128xf32, #tpu.memory_space<vmem>>, %arg9: memref<1x128xf32, #tpu.memory_space<vmem>>, %arg10: memref<128x128xf32, #tpu.memory_space<vmem>>, %arg11: memref<1x128xf32, #tpu.memory_space<vmem>>, %arg12: memref<128x32xf32, #tpu.memory_space<vmem>>, %arg13: memref<1x32xf32, #tpu.memory_space<vmem>>, %arg14: memref<1x8x32xf32, #tpu.memory_space<vmem>>) attributes {dimension_semantics = [#tpu.dimension_semantics<parallel>], iteration_bounds = array<i64: 2>, scalar_prefetch = 0 : i64, scratch_operands = 0 : i64, tpu.core_type = #tpu.core_type<tc>, window_params = [{transform_indices = @transform_0, window_bounds = array<i64: 1, 8, 32>}, {pipeline_mode = #tpu.pipeline_mode<synchronous>, transform_indices = @transform_1, window_bounds = array<i64: 32, 384>}, {pipeline_mode = #tpu.pipeline_mode<synchronous>, transform_indices = @transform_2, window_bounds = array<i64: 1, 384>}, {pipeline_mode = #tpu.pipeline_mode<synchronous>, transform_indices = @transform_3, window_bounds = array<i64: 3, 384>}, {pipeline_mode = #tpu.pipeline_mode<synchronous>, transform_indices = @transform_4, window_bounds = array<i64: 1, 384>}, {pipeline_mode = #tpu.pipeline_mode<synchronous>, transform_indices = @transform_5, window_bounds = array<i64: 128, 128>}, {pipeline_mode = #tpu.pipeline_mode<synchronous>, transform_indices = @transform_6, window_bounds = array<i64: 1, 128>}, {pipeline_mode = #tpu.pipeline_mode<synchronous>, transform_indices = @transform_7, window_bounds = array<i64: 128, 128>}, {pipeline_mode = #tpu.pipeline_mode<synchronous>, transform_indices = @transform_8, window_bounds = array<i64: 1, 128>}, {pipeline_mode = #tpu.pipeline_mode<synchronous>, transform_indices = @transform_9, window_bounds = array<i64: 128, 128>}, {pipeline_mode = #tpu.pipeline_mode<synchronous>, transform_indices = @transform_10, window_bounds = array<i64: 1, 128>}, {pipeline_mode = #tpu.pipeline_mode<synchronous>, transform_indices = @transform_11, window_bounds = array<i64: 128, 32>}, {pipeline_mode = #tpu.pipeline_mode<synchronous>, transform_indices = @transform_12, window_bounds = array<i64: 1, 32>}, {transform_indices = @transform_13, window_bounds = array<i64: 1, 8, 32>}]} {
    %c0 = arith.constant 0 : index
    %c0_0 = arith.constant 0 : index
    %c0_1 = arith.constant 0 : index
    %0 = vector.load %arg1[%c0, %c0_0, %c0_1] : memref<1x8x32xf32, #tpu.memory_space<vmem>>, vector<1x8x32xf32>
    %1 = vector.shape_cast %0 : vector<1x8x32xf32> to vector<8x32xf32>
    %c0_2 = arith.constant 0 : index
    %c0_3 = arith.constant 0 : index
    %2 = vector.load %arg2[%c0_2, %c0_3] : memref<32x384xf32, #tpu.memory_space<vmem>>, vector<32x384xf32>
    %cst = arith.constant dense<0.000000e+00> : vector<8x384xf32>
    %3 = tpu.matmul %1, %2, %cst {dimension_numbers = #tpu.dot_dimension_numbers<[1], [0], [0], [1], [0, 0, 1, 1], [], []>} : vector<8x32xf32>, vector<32x384xf32>, vector<8x384xf32> -> vector<8x384xf32>
    %c0_4 = arith.constant 0 : index
    %c0_5 = arith.constant 0 : index
    %4 = vector.load %arg3[%c0_4, %c0_5] : memref<1x384xf32, #tpu.memory_space<vmem>>, vector<1x384xf32>
    %5 = vector.broadcast %4 : vector<1x384xf32> to vector<8x384xf32>
    %6 = arith.addf %3, %5 : vector<8x384xf32>
    %7 = arith.negf %6 : vector<8x384xf32>
    %8 = math.exp %7 : vector<8x384xf32>
    %cst_6 = arith.constant 1.000000e+00 : f32
    %9 = vector.broadcast %cst_6 : f32 to vector<8x384xf32>
    %10 = arith.addf %9, %8 : vector<8x384xf32>
    %11 = arith.divf %9, %10 : vector<8x384xf32>
    %12 = arith.mulf %6, %11 : vector<8x384xf32>
    %13 = tpu.iota {dimensions = array<i32: 0>} : vector<8x1xi32>
    %c1_i32 = arith.constant 1 : i32
    %14 = vector.broadcast %c1_i32 : i32 to vector<8x1xi32>
    %15 = arith.cmpi sge, %13, %14 : vector<8x1xi32>
    %c1_i32_7 = arith.constant 1 : i32
    %16 = tpu.dynamic_rotate %12 by %c1_i32_7 dim 0 : vector<8x384xf32>, i32 -> vector<8x384xf32>
    %cst_8 = arith.constant 0.000000e+00 : f32
    %17 = vector.shape_cast %15 : vector<8x1xi1> to vector<8x1xi1>
    %18 = vector.broadcast %17 : vector<8x1xi1> to vector<8x384xi1>
    %19 = vector.broadcast %cst_8 : f32 to vector<8x384xf32>
    %20 = arith.select %18, %16, %19 : vector<8x384xi1>, vector<8x384xf32>
    %c6_i32 = arith.constant 6 : i32
    %21 = vector.broadcast %c6_i32 : i32 to vector<8x1xi32>
    %22 = arith.cmpi sle, %13, %21 : vector<8x1xi32>
    %c7_i32 = arith.constant 7 : i32
    %23 = tpu.dynamic_rotate %12 by %c7_i32 dim 0 : vector<8x384xf32>, i32 -> vector<8x384xf32>
    %cst_9 = arith.constant 0.000000e+00 : f32
    %24 = vector.shape_cast %22 : vector<8x1xi1> to vector<8x1xi1>
    %25 = vector.broadcast %24 : vector<8x1xi1> to vector<8x384xi1>
    %26 = vector.broadcast %cst_9 : f32 to vector<8x384xf32>
    %27 = arith.select %25, %23, %26 : vector<8x384xi1>, vector<8x384xf32>
    %c0_10 = arith.constant 0 : index
    %c0_11 = arith.constant 0 : index
    %28 = vector.load %arg4[%c0_10, %c0_11] : memref<3x384xf32, #tpu.memory_space<vmem>>, vector<1x384xf32>
    %29 = vector.broadcast %28 : vector<1x384xf32> to vector<8x384xf32>
    %30 = arith.mulf %20, %29 : vector<8x384xf32>
    %c1 = arith.constant 1 : index
    %c0_12 = arith.constant 0 : index
    %31 = vector.load %arg4[%c1, %c0_12] : memref<3x384xf32, #tpu.memory_space<vmem>>, vector<1x384xf32>
    %32 = vector.broadcast %31 : vector<1x384xf32> to vector<8x384xf32>
    %33 = arith.mulf %12, %32 : vector<8x384xf32>
    %34 = arith.addf %30, %33 : vector<8x384xf32>
    %c2 = arith.constant 2 : index
    %c0_13 = arith.constant 0 : index
    %35 = vector.load %arg4[%c2, %c0_13] : memref<3x384xf32, #tpu.memory_space<vmem>>, vector<1x384xf32>
    %36 = vector.broadcast %35 : vector<1x384xf32> to vector<8x384xf32>
    %37 = arith.mulf %27, %36 : vector<8x384xf32>
    %38 = arith.addf %34, %37 : vector<8x384xf32>
    %c0_14 = arith.constant 0 : index
    %c0_15 = arith.constant 0 : index
    %39 = vector.load %arg5[%c0_14, %c0_15] : memref<1x384xf32, #tpu.memory_space<vmem>>, vector<1x384xf32>
    %40 = vector.broadcast %39 : vector<1x384xf32> to vector<8x384xf32>
    %41 = arith.addf %38, %40 : vector<8x384xf32>
    %42 = vector.extract_strided_slice %41 {offsets = [0, 0], sizes = [8, 128], strides = [1, 1]} : vector<8x384xf32> to vector<8x128xf32>
    %c0_16 = arith.constant 0 : index
    %c0_17 = arith.constant 0 : index
    %43 = vector.load %arg6[%c0_16, %c0_17] : memref<128x128xf32, #tpu.memory_space<vmem>>, vector<128x128xf32>
    %cst_18 = arith.constant dense<0.000000e+00> : vector<8x128xf32>
    %44 = tpu.matmul %42, %43, %cst_18 {dimension_numbers = #tpu.dot_dimension_numbers<[1], [0], [0], [1], [0, 0, 1, 1], [], []>} : vector<8x128xf32>, vector<128x128xf32>, vector<8x128xf32> -> vector<8x128xf32>
    %c0_19 = arith.constant 0 : index
    %c0_20 = arith.constant 0 : index
    %45 = vector.load %arg7[%c0_19, %c0_20] : memref<1x128xf32, #tpu.memory_space<vmem>>, vector<1x128xf32>
    %46 = vector.broadcast %45 : vector<1x128xf32> to vector<8x128xf32>
    %47 = arith.addf %44, %46 : vector<8x128xf32>
    %48 = vector.extract_strided_slice %41 {offsets = [0, 128], sizes = [8, 128], strides = [1, 1]} : vector<8x384xf32> to vector<8x128xf32>
    %c0_21 = arith.constant 0 : index
    %c0_22 = arith.constant 0 : index
    %49 = vector.load %arg8[%c0_21, %c0_22] : memref<128x128xf32, #tpu.memory_space<vmem>>, vector<128x128xf32>
    %cst_23 = arith.constant dense<0.000000e+00> : vector<8x128xf32>
    %50 = tpu.matmul %48, %49, %cst_23 {dimension_numbers = #tpu.dot_dimension_numbers<[1], [0], [0], [1], [0, 0, 1, 1], [], []>} : vector<8x128xf32>, vector<128x128xf32>, vector<8x128xf32> -> vector<8x128xf32>
    %c0_24 = arith.constant 0 : index
    %c0_25 = arith.constant 0 : index
    %51 = vector.load %arg9[%c0_24, %c0_25] : memref<1x128xf32, #tpu.memory_space<vmem>>, vector<1x128xf32>
    %52 = vector.broadcast %51 : vector<1x128xf32> to vector<8x128xf32>
    %53 = arith.addf %50, %52 : vector<8x128xf32>
    %54 = vector.extract_strided_slice %41 {offsets = [0, 256], sizes = [8, 128], strides = [1, 1]} : vector<8x384xf32> to vector<8x128xf32>
    %c0_26 = arith.constant 0 : index
    %c0_27 = arith.constant 0 : index
    %55 = vector.load %arg10[%c0_26, %c0_27] : memref<128x128xf32, #tpu.memory_space<vmem>>, vector<128x128xf32>
    %cst_28 = arith.constant dense<0.000000e+00> : vector<8x128xf32>
    %56 = tpu.matmul %54, %55, %cst_28 {dimension_numbers = #tpu.dot_dimension_numbers<[1], [0], [0], [1], [0, 0, 1, 1], [], []>} : vector<8x128xf32>, vector<128x128xf32>, vector<8x128xf32> -> vector<8x128xf32>
    %c0_29 = arith.constant 0 : index
    %c0_30 = arith.constant 0 : index
    %57 = vector.load %arg11[%c0_29, %c0_30] : memref<1x128xf32, #tpu.memory_space<vmem>>, vector<1x128xf32>
    %58 = vector.broadcast %57 : vector<1x128xf32> to vector<8x128xf32>
    %59 = arith.addf %56, %58 : vector<8x128xf32>
    %cst_31 = arith.constant 0.176776692 : f32
    %60 = vector.broadcast %cst_31 : f32 to vector<8x128xf32>
    %61 = arith.mulf %47, %60 : vector<8x128xf32>
    %cst_32 = arith.constant 0.000000e+00 : f32
    %62 = vector.broadcast %cst_32 : f32 to vector<8x32xf32>
    %63 = vector.extract_strided_slice %61 {offsets = [0, 0], sizes = [8, 32], strides = [1, 1]} : vector<8x128xf32> to vector<8x32xf32>
    %64 = vector.extract_strided_slice %53 {offsets = [0, 0], sizes = [8, 32], strides = [1, 1]} : vector<8x128xf32> to vector<8x32xf32>
    %65 = vector.extract_strided_slice %59 {offsets = [0, 0], sizes = [8, 32], strides = [1, 1]} : vector<8x128xf32> to vector<8x32xf32>
    %cst_33 = arith.constant dense<0.000000e+00> : vector<8x8xf32>
    %66 = tpu.matmul %63, %64, %cst_33 {dimension_numbers = #tpu.dot_dimension_numbers<[1], [1], [0], [0], [0, 0, 1, 0], [], []>} : vector<8x32xf32>, vector<8x32xf32>, vector<8x8xf32> -> vector<8x8xf32>
    %cst_34 = arith.constant dense<0xFF800000> : vector<8xf32>
    %67 = vector.multi_reduction <maximumf>, %66, %cst_34 [1] : vector<8x8xf32> to vector<8xf32>
    %68 = vector.shape_cast %67 : vector<8xf32> to vector<8x1xf32>
    %69 = vector.broadcast %68 : vector<8x1xf32> to vector<8x8xf32>
    %70 = arith.subf %66, %69 : vector<8x8xf32>
    %71 = math.exp %70 : vector<8x8xf32>
    %cst_35 = arith.constant dense<0.000000e+00> : vector<8xf32>
    %72 = vector.multi_reduction <add>, %71, %cst_35 [1] : vector<8x8xf32> to vector<8xf32>
    %73 = vector.shape_cast %72 : vector<8xf32> to vector<8x1xf32>
    %cst_36 = arith.constant dense<0.000000e+00> : vector<8x32xf32>
    %74 = tpu.matmul %71, %65, %cst_36 {dimension_numbers = #tpu.dot_dimension_numbers<[1], [0], [0], [1], [0, 0, 1, 1], [], []>} : vector<8x8xf32>, vector<8x32xf32>, vector<8x32xf32> -> vector<8x32xf32>
    %75 = tpu.reciprocal %73 {approx = true} : vector<8x1xf32> -> vector<8x1xf32>
    %76 = vector.broadcast %75 : vector<8x1xf32> to vector<8x32xf32>
    %77 = arith.mulf %74, %76 : vector<8x32xf32>
    %c0_37 = arith.constant 0 : index
    %c0_38 = arith.constant 0 : index
    %78 = vector.load %arg12[%c0_37, %c0_38] : memref<128x32xf32, #tpu.memory_space<vmem>>, vector<32x32xf32>
    %cst_39 = arith.constant dense<0.000000e+00> : vector<8x32xf32>
    %79 = tpu.matmul %77, %78, %cst_39 {dimension_numbers = #tpu.dot_dimension_numbers<[1], [0], [0], [1], [0, 0, 1, 1], [], []>} : vector<8x32xf32>, vector<32x32xf32>, vector<8x32xf32> -> vector<8x32xf32>
    %80 = arith.addf %62, %79 : vector<8x32xf32>
    %81 = vector.extract_strided_slice %61 {offsets = [0, 32], sizes = [8, 32], strides = [1, 1]} : vector<8x128xf32> to vector<8x32xf32>
    %82 = vector.extract_strided_slice %53 {offsets = [0, 32], sizes = [8, 32], strides = [1, 1]} : vector<8x128xf32> to vector<8x32xf32>
    %83 = vector.extract_strided_slice %59 {offsets = [0, 32], sizes = [8, 32], strides = [1, 1]} : vector<8x128xf32> to vector<8x32xf32>
    %cst_40 = arith.constant dense<0.000000e+00> : vector<8x8xf32>
    %84 = tpu.matmul %81, %82, %cst_40 {dimension_numbers = #tpu.dot_dimension_numbers<[1], [1], [0], [0], [0, 0, 1, 0], [], []>} : vector<8x32xf32>, vector<8x32xf32>, vector<8x8xf32> -> vector<8x8xf32>
    %cst_41 = arith.constant dense<0xFF800000> : vector<8xf32>
    %85 = vector.multi_reduction <maximumf>, %84, %cst_41 [1] : vector<8x8xf32> to vector<8xf32>
    %86 = vector.shape_cast %85 : vector<8xf32> to vector<8x1xf32>
    %87 = vector.broadcast %86 : vector<8x1xf32> to vector<8x8xf32>
    %88 = arith.subf %84, %87 : vector<8x8xf32>
    %89 = math.exp %88 : vector<8x8xf32>
    %cst_42 = arith.constant dense<0.000000e+00> : vector<8xf32>
    %90 = vector.multi_reduction <add>, %89, %cst_42 [1] : vector<8x8xf32> to vector<8xf32>
    %91 = vector.shape_cast %90 : vector<8xf32> to vector<8x1xf32>
    %cst_43 = arith.constant dense<0.000000e+00> : vector<8x32xf32>
    %92 = tpu.matmul %89, %83, %cst_43 {dimension_numbers = #tpu.dot_dimension_numbers<[1], [0], [0], [1], [0, 0, 1, 1], [], []>} : vector<8x8xf32>, vector<8x32xf32>, vector<8x32xf32> -> vector<8x32xf32>
    %93 = tpu.reciprocal %91 {approx = true} : vector<8x1xf32> -> vector<8x1xf32>
    %94 = vector.broadcast %93 : vector<8x1xf32> to vector<8x32xf32>
    %95 = arith.mulf %92, %94 : vector<8x32xf32>
    %c32 = arith.constant 32 : index
    %c0_44 = arith.constant 0 : index
    %96 = vector.load %arg12[%c32, %c0_44] : memref<128x32xf32, #tpu.memory_space<vmem>>, vector<32x32xf32>
    %cst_45 = arith.constant dense<0.000000e+00> : vector<8x32xf32>
    %97 = tpu.matmul %95, %96, %cst_45 {dimension_numbers = #tpu.dot_dimension_numbers<[1], [0], [0], [1], [0, 0, 1, 1], [], []>} : vector<8x32xf32>, vector<32x32xf32>, vector<8x32xf32> -> vector<8x32xf32>
    %98 = arith.addf %80, %97 : vector<8x32xf32>
    %99 = vector.extract_strided_slice %61 {offsets = [0, 64], sizes = [8, 32], strides = [1, 1]} : vector<8x128xf32> to vector<8x32xf32>
    %100 = vector.extract_strided_slice %53 {offsets = [0, 64], sizes = [8, 32], strides = [1, 1]} : vector<8x128xf32> to vector<8x32xf32>
    %101 = vector.extract_strided_slice %59 {offsets = [0, 64], sizes = [8, 32], strides = [1, 1]} : vector<8x128xf32> to vector<8x32xf32>
    %cst_46 = arith.constant dense<0.000000e+00> : vector<8x8xf32>
    %102 = tpu.matmul %99, %100, %cst_46 {dimension_numbers = #tpu.dot_dimension_numbers<[1], [1], [0], [0], [0, 0, 1, 0], [], []>} : vector<8x32xf32>, vector<8x32xf32>, vector<8x8xf32> -> vector<8x8xf32>
    %cst_47 = arith.constant dense<0xFF800000> : vector<8xf32>
    %103 = vector.multi_reduction <maximumf>, %102, %cst_47 [1] : vector<8x8xf32> to vector<8xf32>
    %104 = vector.shape_cast %103 : vector<8xf32> to vector<8x1xf32>
    %105 = vector.broadcast %104 : vector<8x1xf32> to vector<8x8xf32>
    %106 = arith.subf %102, %105 : vector<8x8xf32>
    %107 = math.exp %106 : vector<8x8xf32>
    %cst_48 = arith.constant dense<0.000000e+00> : vector<8xf32>
    %108 = vector.multi_reduction <add>, %107, %cst_48 [1] : vector<8x8xf32> to vector<8xf32>
    %109 = vector.shape_cast %108 : vector<8xf32> to vector<8x1xf32>
    %cst_49 = arith.constant dense<0.000000e+00> : vector<8x32xf32>
    %110 = tpu.matmul %107, %101, %cst_49 {dimension_numbers = #tpu.dot_dimension_numbers<[1], [0], [0], [1], [0, 0, 1, 1], [], []>} : vector<8x8xf32>, vector<8x32xf32>, vector<8x32xf32> -> vector<8x32xf32>
    %111 = tpu.reciprocal %109 {approx = true} : vector<8x1xf32> -> vector<8x1xf32>
    %112 = vector.broadcast %111 : vector<8x1xf32> to vector<8x32xf32>
    %113 = arith.mulf %110, %112 : vector<8x32xf32>
    %c64 = arith.constant 64 : index
    %c0_50 = arith.constant 0 : index
    %114 = vector.load %arg12[%c64, %c0_50] : memref<128x32xf32, #tpu.memory_space<vmem>>, vector<32x32xf32>
    %cst_51 = arith.constant dense<0.000000e+00> : vector<8x32xf32>
    %115 = tpu.matmul %113, %114, %cst_51 {dimension_numbers = #tpu.dot_dimension_numbers<[1], [0], [0], [1], [0, 0, 1, 1], [], []>} : vector<8x32xf32>, vector<32x32xf32>, vector<8x32xf32> -> vector<8x32xf32>
    %116 = arith.addf %98, %115 : vector<8x32xf32>
    %117 = vector.extract_strided_slice %61 {offsets = [0, 96], sizes = [8, 32], strides = [1, 1]} : vector<8x128xf32> to vector<8x32xf32>
    %118 = vector.extract_strided_slice %53 {offsets = [0, 96], sizes = [8, 32], strides = [1, 1]} : vector<8x128xf32> to vector<8x32xf32>
    %119 = vector.extract_strided_slice %59 {offsets = [0, 96], sizes = [8, 32], strides = [1, 1]} : vector<8x128xf32> to vector<8x32xf32>
    %cst_52 = arith.constant dense<0.000000e+00> : vector<8x8xf32>
    %120 = tpu.matmul %117, %118, %cst_52 {dimension_numbers = #tpu.dot_dimension_numbers<[1], [1], [0], [0], [0, 0, 1, 0], [], []>} : vector<8x32xf32>, vector<8x32xf32>, vector<8x8xf32> -> vector<8x8xf32>
    %cst_53 = arith.constant dense<0xFF800000> : vector<8xf32>
    %121 = vector.multi_reduction <maximumf>, %120, %cst_53 [1] : vector<8x8xf32> to vector<8xf32>
    %122 = vector.shape_cast %121 : vector<8xf32> to vector<8x1xf32>
    %123 = vector.broadcast %122 : vector<8x1xf32> to vector<8x8xf32>
    %124 = arith.subf %120, %123 : vector<8x8xf32>
    %125 = math.exp %124 : vector<8x8xf32>
    %cst_54 = arith.constant dense<0.000000e+00> : vector<8xf32>
    %126 = vector.multi_reduction <add>, %125, %cst_54 [1] : vector<8x8xf32> to vector<8xf32>
    %127 = vector.shape_cast %126 : vector<8xf32> to vector<8x1xf32>
    %cst_55 = arith.constant dense<0.000000e+00> : vector<8x32xf32>
    %128 = tpu.matmul %125, %119, %cst_55 {dimension_numbers = #tpu.dot_dimension_numbers<[1], [0], [0], [1], [0, 0, 1, 1], [], []>} : vector<8x8xf32>, vector<8x32xf32>, vector<8x32xf32> -> vector<8x32xf32>
    %129 = tpu.reciprocal %127 {approx = true} : vector<8x1xf32> -> vector<8x1xf32>
    %130 = vector.broadcast %129 : vector<8x1xf32> to vector<8x32xf32>
    %131 = arith.mulf %128, %130 : vector<8x32xf32>
    %c96 = arith.constant 96 : index
    %c0_56 = arith.constant 0 : index
    %132 = vector.load %arg12[%c96, %c0_56] : memref<128x32xf32, #tpu.memory_space<vmem>>, vector<32x32xf32>
    %cst_57 = arith.constant dense<0.000000e+00> : vector<8x32xf32>
    %133 = tpu.matmul %131, %132, %cst_57 {dimension_numbers = #tpu.dot_dimension_numbers<[1], [0], [0], [1], [0, 0, 1, 1], [], []>} : vector<8x32xf32>, vector<32x32xf32>, vector<8x32xf32> -> vector<8x32xf32>
    %134 = arith.addf %116, %133 : vector<8x32xf32>
    %c0_58 = arith.constant 0 : index
    %c0_59 = arith.constant 0 : index
    %135 = vector.load %arg13[%c0_58, %c0_59] : memref<1x32xf32, #tpu.memory_space<vmem>>, vector<1x32xf32>
    %136 = vector.broadcast %135 : vector<1x32xf32> to vector<8x32xf32>
    %137 = arith.addf %134, %136 : vector<8x32xf32>
    %c0_60 = arith.constant 0 : index
    %c0_61 = arith.constant 0 : index
    %c0_62 = arith.constant 0 : index
    %138 = vector.load %arg14[%c0_60, %c0_61, %c0_62] : memref<1x8x32xf32, #tpu.memory_space<vmem>>, vector<1x8x32xf32>
    %139 = vector.shape_cast %138 : vector<1x8x32xf32> to vector<8x32xf32>
    %140 = vector.shape_cast %137 : vector<8x32xf32> to vector<1x8x32xf32>
    tpu.vector_store %arg14[%c0_60, %c0_61, %c0_62], %140 {strides = array<i32>} : memref<1x8x32xf32, #tpu.memory_space<vmem>>, vector<1x8x32xf32>,
    return
  }
  func.func @transform_0(%arg0: i32) -> (i32, i32, i32) {
    %c0_i32 = arith.constant 0 : i32
    %c0_i32_0 = arith.constant 0 : i32
    %c0_i32_1 = arith.constant 0 : i32
    return %arg0, %c0_i32, %c0_i32_0 : i32, i32, i32
  }
  func.func @transform_1(%arg0: i32) -> (i32, i32) {
    %c0_i32 = arith.constant 0 : i32
    %c0_i32_0 = arith.constant 0 : i32
    %c0_i32_1 = arith.constant 0 : i32
    return %c0_i32, %c0_i32_0 : i32, i32
  }
  func.func @transform_2(%arg0: i32) -> (i32, i32) {
    %c0_i32 = arith.constant 0 : i32
    %c0_i32_0 = arith.constant 0 : i32
    %c0_i32_1 = arith.constant 0 : i32
    return %c0_i32, %c0_i32_0 : i32, i32
  }
  func.func @transform_3(%arg0: i32) -> (i32, i32) {
    %c0_i32 = arith.constant 0 : i32
    %c0_i32_0 = arith.constant 0 : i32
    %c0_i32_1 = arith.constant 0 : i32
    return %c0_i32, %c0_i32_0 : i32, i32
  }
  func.func @transform_4(%arg0: i32) -> (i32, i32) {
    %c0_i32 = arith.constant 0 : i32
    %c0_i32_0 = arith.constant 0 : i32
    %c0_i32_1 = arith.constant 0 : i32
    return %c0_i32, %c0_i32_0 : i32, i32
  }
  func.func @transform_5(%arg0: i32) -> (i32, i32) {
    %c0_i32 = arith.constant 0 : i32
    %c0_i32_0 = arith.constant 0 : i32
    %c0_i32_1 = arith.constant 0 : i32
    return %c0_i32, %c0_i32_0 : i32, i32
  }
  func.func @transform_6(%arg0: i32) -> (i32, i32) {
    %c0_i32 = arith.constant 0 : i32
    %c0_i32_0 = arith.constant 0 : i32
    %c0_i32_1 = arith.constant 0 : i32
    return %c0_i32, %c0_i32_0 : i32, i32
  }
  func.func @transform_7(%arg0: i32) -> (i32, i32) {
    %c0_i32 = arith.constant 0 : i32
    %c0_i32_0 = arith.constant 0 : i32
    %c0_i32_1 = arith.constant 0 : i32
    return %c0_i32, %c0_i32_0 : i32, i32
  }
  func.func @transform_8(%arg0: i32) -> (i32, i32) {
    %c0_i32 = arith.constant 0 : i32
    %c0_i32_0 = arith.constant 0 : i32
    %c0_i32_1 = arith.constant 0 : i32
    return %c0_i32, %c0_i32_0 : i32, i32
  }
  func.func @transform_9(%arg0: i32) -> (i32, i32) {
    %c0_i32 = arith.constant 0 : i32
    %c0_i32_0 = arith.constant 0 : i32
    %c0_i32_1 = arith.constant 0 : i32
    return %c0_i32, %c0_i32_0 : i32, i32
  }
  func.func @transform_10(%arg0: i32) -> (i32, i32) {
    %c0_i32 = arith.constant 0 : i32
    %c0_i32_0 = arith.constant 0 : i32
    %c0_i32_1 = arith.constant 0 : i32
    return %c0_i32, %c0_i32_0 : i32, i32
  }
  func.func @transform_11(%arg0: i32) -> (i32, i32) {
    %c0_i32 = arith.constant 0 : i32
    %c0_i32_0 = arith.constant 0 : i32
    %c0_i32_1 = arith.constant 0 : i32
    return %c0_i32, %c0_i32_0 : i32, i32
  }
  func.func @transform_12(%arg0: i32) -> (i32, i32) {
    %c0_i32 = arith.constant 0 : i32
    %c0_i32_0 = arith.constant 0 : i32
    %c0_i32_1 = arith.constant 0 : i32
    return %c0_i32, %c0_i32_0 : i32, i32
  }
  func.func @transform_13(%arg0: i32) -> (i32, i32, i32) {
    %c0_i32 = arith.constant 0 : i32
    %c0_i32_0 = arith.constant 0 : i32
    %c0_i32_1 = arith.constant 0 : i32
    return %arg0, %c0_i32, %c0_i32_0 : i32, i32, i32
  }
}

</mosaic_0001>

<bundles_post_ra>
// kernel: titan_attention_forward.1
= control target key start
LH: loop header
LB: loop body
LE: loop exit
PB: predicated region body
PF: predicated region fallthrough
CT: control target
= control target key end

     0   :  { %s1954_s0 = inlined_call_operand.vmem [shape: f32[2,8,32], index: 0, kind: input, shape index: {}]   ;;  %s1955_s1 = inlined_call_operand.vmem [shape: f32[32,384], index: 1, kind: input, shape index: {}]   ;;  %s1956_s2 = inlined_call_operand.vmem [shape: f32[1,384], index: 2, kind: input, shape index: {}]   ;;  %s1957_s3 = inlined_call_operand.vmem [shape: f32[3,384], index: 3, kind: input, shape index: {}]   ;;  %s1958_s4 = inlined_call_operand.vmem [shape: f32[1,384], index: 4, kind: input, shape index: {}]   ;;  %s1959_s5 = inlined_call_operand.vmem [shape: f32[128,128], index: 5, kind: input, shape index: {}]   ;;  %s1960_s6 = inlined_call_operand.vmem [shape: f32[1,128], index: 6, kind: input, shape index: {}]   ;;  %s1961_s7 = inlined_call_operand.vmem [shape: f32[128,128], index: 7, kind: input, shape index: {}]   ;;  %s1962_s8 = inlined_call_operand.vmem [shape: f32[1,128], index: 8, kind: input, shape index: {}]   ;;  %s1963_s9 = inlined_call_operand.hbm [shape: f32[128,128], index: 9, kind: input, shape index: {}]   ;;  %s1964_s10 = inlined_call_operand.vmem [shape: f32[1,128], index: 10, kind: input, shape index: {}]   ;;  %s1965_s11 = inlined_call_operand.vmem [shape: f32[128,32], index: 11, kind: input, shape index: {}]   ;;  %s1966_s12 = inlined_call_operand.vmem [shape: f32[1,32], index: 12, kind: input, shape index: {}]   ;;  %s1967_s13 = inlined_call_operand.hbm [shape: f32[2,8,32], index: 13, kind: output, shape index: {}]  }
   0x1   :  { %1971 = sst [smem:[#allocation11_spill]] %s1963_s9 }
   0x2   :  { %18 = vsyncpa [#allocation3], 0 }
   0x3   :  { %19 = vsyncpa [#allocation4], 0 }
   0x4   :  { %21 = vsyncpa [#allocation4 + $0x1], 0  ;;  %s1548_s25 = smov 0   ;;  %s1550_s26 = smov 0  }
   0x5   :  { %s1552_s27 = smov 0   ;;  %s1554_s28 = smov 0  }
   0x6 LB: > { %1972 = sst [smem:[#allocation8_spill]] %s1466_s27  ;;  %s1569_s29 = sadd.s32 4294967295, %s1470_s28   ;;  %s1470_s28 = sphi %s1554_s28, %s1978_s28   ;;  %s1466_s27 = sphi %s1552_s27, %s1980_s27   ;;  %s1462_s26 = sphi %s1550_s26, %s1982_s26   ;;  %s1458_s25 = sphi %s1548_s25, %s1981_s25  }
   0x7   : > { %s1251_s30 = sadd.s32 4294967294, %s1470_s28   ;;  %s1573_s14 = sadd.s32 1, %s1470_s28  }
   0x8   : > { %1973 = sst [smem:[#allocation9_spill]] %s1573_s14  ;;  %s312_s15 = sadd.s32 1, %s1466_s27 }
   0x9   : > { %s309_s16 = ssub.s32 %s1470_s28, %s1573_s14  ;;  %p322_p0 = scmp.ne.s32.totalorder %s1466_s27, %s1462_s26 }
   0xa   : > { %p310_p1 = scmp.eq.s32.totalorder %s309_s16, 0  ;;  %p323_p2 = scmp.eq.s32.totalorder %s1569_s29, 1 }
   0xb   : > { %p328_p3 = scmp.ne.s32.totalorder %s1462_s26, %s1458_s25  ;;  %p329_p4 = scmp.eq.s32.totalorder %s1251_s30, 1 }
   0xc   : > { %s1584_s17 = scalar_select %p310_p1, %s1466_s27, %s312_s15  }
   0xd   : > { %p1586_p5 = por %p323_p2, %p322_p0  ;;  %p1590_p6 = por %p329_p4, %p328_p3 }
   0xe   : > { %1974 = sst [smem:[#allocation10_spill]] %s1584_s17  ;;  %p1252_p7 = scmp.ge.s32.totalorder %s1470_s28, 1 }
   0xf   : > { %p336_p8 = scmp.lt.s32.totalorder %s1470_s28, 3  ;;  %p1301_p9 = scmp.eq.s32.totalorder %s1569_s29, 0 }
  0x10   : > { %s1977_s9 = sld [smem:[#allocation11_spill]]  ;;  %s1472_s23 = smov [#allocation2]  }
  0x11   : > { %p337_p10 = pnand %p1252_p7, %p336_p8  ;;  %s373_s24 = sshll.u32 %s1472_s23, 4  ;;  %s374_s24 = int_to_ptr.vmem [resolvable:$true] %s373_s24 }
  0x12   : > { %s1473_s30 = smov 128   ;;  %s1474_s15 = smov 8  }
  0x13   : > { %p1293_p11 = pneg %p337_p10  ;;  %405 = sbr.rel (%p337_p10) target bundleno = 1261 (0x4ed), region = 72 }
  0x15   : > { %p1294_p12 = pnand %p1301_p9, %p1293_p11 }
  0x16   : > { %s371_s22 = sshll.u32 %s1977_s9, 4  ;;  %s372_s22 = int_to_ptr.hbm [resolvable:$true] %s371_s22 }
  0x17   : > { %1296 = dma.hbm_to_vmem [thread:$0]  (!%p1294_p12), %s372_s22, 2048, %s374_s24, [#allocation3], %s1473_s30, %s1473_s30, %s1474_s15  }
  0x18   : > { %1449 = dma.done.wait (%p1301_p9), [#allocation3], 2048  }
  0x19   : > { %1451 = vsyncadd (%p1301_p9), [#allocation3], 4294965248  ;;  %p449_p13 = scmp.lt.s32.totalorder %s1569_s29, 1  ;;  %v463_v0 = vld [vmem:[%s1955_s1 + $0x48] sm:$0xff]  ;;  %v464_v1 = vld [vmem:[%s1955_s1 + $0x50] sm:$0xff]  ;;  %vm474_vm0 = vcmask 261120  }
  0x1a   : > { %v460_v2 = vld [vmem:[%s1955_s1 + $0x30] sm:$0xff]  ;;  %490 = vmatpush.msra.mxu0 %v463_v0  ;;  %510 = vmatpush.msra.mxu1 %v464_v1  ;;  %v461_v3 = vld [vmem:[%s1955_s1 + $0x38] sm:$0xff]  ;;  %v458_v5 = vld [vmem:[%s1955_s1 + $0x20] sm:$0xff]  ;;  %v598_v1 = vlaneseq  ;;  %s1476_s21 = smov 96   ;;  %vm817_vm15 = vcmask 64512  }
  0x1b   : > { %s450_s16 = scalar_select %p449_p13, %s1569_s29, 1  ;;  %v457_v4 = vld [vmem:[%s1955_s1 + $0x18] sm:$0xff]  ;;  %v454_v6 = vld [vmem:[%s1955_s1] sm:$0xff]  ;;  %v455_v7 = vld [vmem:[%s1955_s1 + $0x8] sm:$0xff] }
  0x1c   : > { %491 = vmatpush.msra.mxu0 %v460_v2  ;;  %511 = vmatpush.msra.mxu1 %v461_v3  ;;  %v685_v9 = vld [vmem:[%s1959_s5 + $0x78] sm:$0xff]  ;;  %v684_v11 = vld [vmem:[%s1959_s5 + $0x70] sm:$0xff]  ;;  %v683_v13 = vld [vmem:[%s1959_s5 + $0x68] sm:$0xff] }
  0x1d   : > { %s1258_s20 = sshll.u32 %s450_s16, 3  ;;  %v725_v10 = vld [vmem:[%s1961_s7 + $0x78] sm:$0xff]  ;;  %690 = vmatpush.msra.mxu3 %v685_v9  ;;  %v724_v12 = vld [vmem:[%s1961_s7 + $0x70] sm:$0xff]  ;;  %v723_v14 = vld [vmem:[%s1961_s7 + $0x68] sm:$0xff]  ;;  %s1475_s16 = smov 64  }
  0x1e   : > { %s452_s14 = scalar_lea.vmem %s1954_s0, %s1258_s20  ;;  %492 = vmatpush.msra.mxu0 %v457_v4  ;;  %512 = vmatpush.msra.mxu1 %v458_v5  ;;  %v682_v15 = vld [vmem:[%s1959_s5 + $0x60] sm:$0xff]  ;;  %v681_v17 = vld [vmem:[%s1959_s5 + $0x58] sm:$0xff]  ;;  %v680_v19 = vld [vmem:[%s1959_s5 + $0x50] sm:$0xff] }
  0x1f   : > { %v1635_v8 = vld [vmem:[%s452_s14] sm:$0xff]  ;;  %691 = vmatpush.msra.mxu3 %v684_v11  ;;  %v721_v18 = vld [vmem:[%s1961_s7 + $0x58] sm:$0xff]  ;;  %v720_v20 = vld [vmem:[%s1961_s7 + $0x50] sm:$0xff]  ;;  %v1769_v11 = vshrl.u32 %v598_v1, 7  ;;  %s1477_s14 = smov 32  }
  0x20   : > { %493 = vmatpush.msra.mxu0 %v454_v6  ;;  %513 = vmatpush.msra.mxu1 %v455_v7  ;;  %v722_v16 = vld [vmem:[%s1961_s7 + $0x60] sm:$0xff]  ;;  %v679_v21 = vld [vmem:[%s1959_s5 + $0x48] sm:$0xff]  ;;  %v677_v28 = vld [vmem:[%s1959_s5 + $0x38] sm:$0xff] }
  0x21   : > { %1259 = vmatmul.msk.f32.vlgmr.msra.gmra.mxu0 %vm474_vm0, %v1635_v8  ;;  %1260 = vmatmul.msk.f32.vlgmr.msra.gmra.mxu1 %vm474_vm0, %v1635_v8  ;;  %v719_v22 = vld [vmem:[%s1961_s7 + $0x48] sm:$0xff]  ;;  %v1686_v23 = vld [vmem:[%s1956_s2] sm:$0x7]  ;;  %v717_v29 = vld [vmem:[%s1961_s7 + $0x38] sm:$0xff]  ;;  %vm600_vm9 = vcmp.ge.s32.totalorder %v1769_v11, 1  ;;  %vm609_vm10 = vcmp.le.s32.totalorder %v1769_v11, 6 }
  0x22   : > { %730 = vmatpush.msrb.mxu0 %v725_v10  ;;  %692 = vmatpush.msra.mxu3 %v683_v13  ;;  %v678_v24 = vld [vmem:[%s1959_s5 + $0x40] sm:$0xff]  ;;  %v468_v26 = vperm.slane %v1686_v23, 0  ;;  %v469_v27 = vperm.slane %v1686_v23, 1  ;;  %v676_v30 = vld [vmem:[%s1959_s5 + $0x30] sm:$0xff]  ;;  %v675_v36 = vld [vmem:[%s1959_s5 + $0x28] sm:$0xff] }
  0x23   : > { %v718_v25 = vld [vmem:[%s1961_s7 + $0x40] sm:$0xff]  ;;  %v716_v31 = vld [vmem:[%s1961_s7 + $0x30] sm:$0xff]  ;;  %v715_v37 = vld [vmem:[%s1961_s7 + $0x28] sm:$0xff] }
  0x24   : > { %731 = vmatpush.msrb.mxu0 %v724_v12  ;;  %693 = vmatpush.msra.mxu3 %v682_v15  ;;  %v674_v40 = vld [vmem:[%s1959_s5 + $0x20] sm:$0xff]  ;;  %v673_v42 = vld [vmem:[%s1959_s5 + $0x18] sm:$0xff]  ;;  %v672_v44 = vld [vmem:[%s1959_s5 + $0x10] sm:$0xff] }
  0x25   : > { %v714_v41 = vld [vmem:[%s1961_s7 + $0x20] sm:$0xff]  ;;  %v713_v43 = vld [vmem:[%s1961_s7 + $0x18] sm:$0xff]  ;;  %v712_v45 = vld [vmem:[%s1961_s7 + $0x10] sm:$0xff] }
  0x26   : > { %732 = vmatpush.msrb.mxu0 %v723_v14  ;;  %694 = vmatpush.msra.mxu3 %v681_v17  ;;  %v671_v46 = vld [vmem:[%s1959_s5 + $0x8] sm:$0xff]  ;;  %v670_v48 = vld [vmem:[%s1959_s5] sm:$0xff]  ;;  %v465_v54 = vld [vmem:[%s1955_s1 + $0x58] sm:$0xff] }
  0x27   : > { %v711_v47 = vld [vmem:[%s1961_s7 + $0x8] sm:$0xff]  ;;  %v710_v49 = vld [vmem:[%s1961_s7] sm:$0xff]  ;;  %530 = vmatpush.msra.mxu2 %v465_v54  ;;  %v456_v57 = vld [vmem:[%s1955_s1 + $0x10] sm:$0xff] }
  0x28   : > { %733 = vmatpush.msrb.mxu0 %v722_v16  ;;  %695 = vmatpush.msra.mxu3 %v680_v19  ;;  %v462_v55 = vld [vmem:[%s1955_s1 + $0x40] sm:$0xff]  ;;  %v459_v56 = vld [vmem:[%s1955_s1 + $0x28] sm:$0xff] }
  0x29   : > { %531 = vmatpush.msra.mxu2 %v462_v55  ;;  %v1774_v14 = vld [vmem:[%s1957_s3] ss:$4 sm:$0x7] }
  0x2a   : > { %734 = vmatpush.msrb.mxu0 %v721_v18  ;;  %696 = vmatpush.msra.mxu3 %v679_v21  ;;  %v853_v11 = vld [vmem:[%s1965_s11 + $0x8] sm:$0xff] }
  0x2b   : > { %532 = vmatpush.msra.mxu2 %v459_v56  ;;  %v765_v56 = vld [vmem:[#allocation2 + $0x78] sm:$0xff] }
  0x2c   : > { %735 = vmatpush.msrb.mxu0 %v720_v20  ;;  %697 = vmatpush.msra.mxu3 %v678_v24  ;;  %v1781_v20 = vld [vmem:[%s1957_s3 + $0x2] ss:$4 sm:$0x7] }
  0x2d   : > { %533 = vmatpush.msra.mxu2 %v456_v57  ;;  %v764_v57 = vld [vmem:[#allocation2 + $0x70] sm:$0xff]  ;;  %770 = vmatpush.msrb.mxu1 %v765_v56 }
  0x2e   : > { %736 = vmatpush.msrb.mxu0 %v719_v22  ;;  %698 = vmatpush.msra.mxu3 %v677_v28  ;;  %v620_v22 = vperm.slane %v1774_v14, 0 }
  0x2f   : > { %1261 = vmatmul.msk.f32.vlgmr.msra.gmra.mxu2 %vm474_vm0, %v1635_v8  ;;  %v1767_v8 = vld [vmem:[%s1957_s3 + $0x1] ss:$4 sm:$0x7]  ;;  %771 = vmatpush.msrb.mxu1 %v764_v57 }
  0x30   : > { %737 = vmatpush.msrb.mxu0 %v718_v25  ;;  %699 = vmatpush.msra.mxu3 %v676_v30  ;;  %v632_v18 = vperm.slane %v1767_v8, 0  ;;  %v647_v30 = vperm.slane %v1781_v20, 0 }
  0x32   : > { %738 = vmatpush.msrb.mxu0 %v717_v29  ;;  %700 = vmatpush.msra.mxu3 %v675_v36 }
  0x34   : > { %739 = vmatpush.msrb.mxu0 %v716_v31  ;;  %701 = vmatpush.msra.mxu3 %v674_v40 }
  0x36   : > { %740 = vmatpush.msrb.mxu0 %v715_v37  ;;  %702 = vmatpush.msra.mxu3 %v673_v42 }
  0x38   : > { %741 = vmatpush.msrb.mxu0 %v714_v41  ;;  %703 = vmatpush.msra.mxu3 %v672_v44 }
  0x3a   : > { %742 = vmatpush.msrb.mxu0 %v713_v43  ;;  %704 = vmatpush.msra.mxu3 %v671_v46 }
  0x3c   : > { %743 = vmatpush.msrb.mxu0 %v712_v45  ;;  %705 = vmatpush.msra.mxu3 %v670_v48 }
  0x3e   : > { %744 = vmatpush.msrb.mxu0 %v711_v47 }
  0x40   : > { %745 = vmatpush.msrb.mxu0 %v710_v49 }
  0x9e   : > { %v495_v32 = vpop.f32.mrf.mxu0  ;;  %v515_v33 = vpop.f32.mrf.mxu1 }
  0x9f   : > { %v1708_v34 = vadd.f32 %v495_v32, %v468_v26  ;;  %v1710_v35 = vadd.f32 %v515_v33, %v469_v27  ;;  %v633_v26 = vperm.slane %v1767_v8, 1  ;;  %v621_v27 = vperm.slane %v1774_v14, 1  ;;  %v1797_v33 = vld [vmem:[%s1958_s4] sm:$0x7] }
  0xa0   : > { %v661_v43 = vperm.slane %v1797_v33, 0  ;;  %v662_v46 = vperm.slane %v1797_v33, 1 }
  0xa1   : > { %v1262_v38 = vmul.f32 -1.442695, %v1708_v34  ;;  %v1263_v39 = vmul.f32 -1.442695, %v1710_v35 }
  0xa3   : > { %1346 = vpow2.f32 %v1262_v38 }
  0xa4   : > { %1348 = vpow2.f32 %v1263_v39 }
  0xa9   : > { %v1347_v50 = vpop.eup %1346 }
  0xaa   : > { %v1349_v51 = vpop.eup %1348  ;;  %v547_v52 = vadd.f32 1.0, %v1347_v50 }
  0xab   : > { %v548_v53 = vadd.f32 1.0, %v1349_v51  ;;  %v470_v51 = vperm.slane %v1686_v23, 2  ;;  %v1343_v23 = vld [vmem:[%s1960_s6] ss:$0 sm:$0xff] }
  0xac   : > { %1350 = vrcp.f32 %v547_v52  ;;  %v561_v63 = vand.u32 2147483648, %v547_v52  ;;  %v559_v3 = vand.u32 2147483647, %v547_v52  ;;  %vm555_vm3 = vweird.f32 %v547_v52 }
  0xad   : > { %1352 = vrcp.f32 %v548_v53  ;;  %v576_v4 = vand.u32 2147483648, %v548_v53  ;;  %v574_v6 = vand.u32 2147483647, %v548_v53  ;;  %vm570_vm5 = vweird.f32 %v548_v53 }
  0xae   : > { %v562_v9 = vor.u32 1.1754944e-38, %v561_v63  ;;  %vm560_vm6 = vcmp.eq.f32.partialorder %v559_v3, 8.507059e+37  ;;  %v761_v63 = vld [vmem:[#allocation2 + $0x58] sm:$0xff] }
  0xaf   : > { %v577_v13 = vor.u32 1.1754944e-38, %v576_v4  ;;  %vm575_vm8 = vcmp.eq.f32.partialorder %v574_v6, 8.507059e+37  ;;  %v760_v4 = vld [vmem:[#allocation2 + $0x50] sm:$0xff]  ;;  %v758_v6 = vld [vmem:[#allocation2 + $0x40] sm:$0xff] }
  0xb2   : > { %v1351_v58 = vpop.eup %1350 }
  0xb3   : > { %v1353_v59 = vpop.eup %1352  ;;  %v551_v60 = vmul.f32 %v1351_v58, %v547_v52  ;;  %vm556_vm1 = vweird.f32 %v1351_v58  ;;  %v535_v52 = vpop.f32.mrf.mxu2 }
  0xb4   : > { %v566_v61 = vmul.f32 %v1353_v59, %v548_v53  ;;  %vm571_vm2 = vweird.f32 %v1353_v59  ;;  %vm557_vm4 = vmor %vm555_vm3, %vm556_vm1  ;;  %v1342_v53 = vld [vmem:[%s1962_s8] ss:$0 sm:$0xff]  ;;  %v1810_v54 = vadd.f32 %v535_v52, %v470_v51 }
  0xb5   : > { %v552_v62 = vsub.f32 1.0, %v551_v60  ;;  %vm572_vm7 = vmor %vm570_vm5, %vm571_vm2  ;;  %v763_v60 = vld [vmem:[#allocation2 + $0x68] sm:$0xff] }
  0xb6   : > { %v567_v0 = vsub.f32 1.0, %v566_v61  ;;  %v1264_v55 = vmul.f32 -1.442695, %v1810_v54  ;;  %v762_v61 = vld [vmem:[#allocation2 + $0x60] sm:$0xff]  ;;  %772 = vmatpush.msrb.mxu1 %v763_v60 }
  0xb7   : > { %v553_v2 = vmul.f32 %v1351_v58, %v552_v62 }
  0xb8   : > { %v568_v5 = vmul.f32 %v1353_v59, %v567_v0  ;;  %1354 = vpow2.f32 %v1264_v55  ;;  %773 = vmatpush.msrb.mxu1 %v762_v61 }
  0xb9   : > { %v554_v7 = vadd.f32 %v1351_v58, %v553_v2 }
  0xba   : > { %v569_v10 = vadd.f32 %v1353_v59, %v568_v5  ;;  %774 = vmatpush.msrb.mxu1 %v761_v63  ;;  %v759_v5 = vld [vmem:[#allocation2 + $0x48] sm:$0xff] }
  0xbb   : > { %v558_v12 = vsel %vm557_vm4, %v1351_v58, %v554_v7  ;;  %v757_v7 = vld [vmem:[#allocation2 + $0x38] sm:$0xff] }
  0xbc   : > { %v563_v15 = vsel %vm560_vm6, %v562_v9, %v558_v12  ;;  %v573_v16 = vsel %vm572_vm7, %v1353_v59, %v569_v10  ;;  %775 = vmatpush.msrb.mxu1 %v760_v4  ;;  %v756_v9 = vld [vmem:[#allocation2 + $0x30] sm:$0xff]  ;;  %v755_v12 = vld [vmem:[#allocation2 + $0x28] sm:$0xff] }
  0xbd   : > { %v595_v17 = vmul.f32 %v563_v15, %v1708_v34  ;;  %v578_v19 = vsel %vm575_vm8, %v577_v13, %v573_v16  ;;  %v648_v34 = vperm.slane %v1781_v20, 1  ;;  %v754_v13 = vld [vmem:[#allocation2 + $0x20] sm:$0xff]  ;;  %v753_v16 = vld [vmem:[#allocation2 + $0x18] sm:$0xff] }
  0xbe   : > { %v596_v21 = vmul.f32 %v578_v19, %v1710_v35  ;;  %v1355_v1 = vpop.eup %1354  ;;  %776 = vmatpush.msrb.mxu1 %v759_v5  ;;  %v751_v19 = vld [vmem:[#allocation2 + $0x8] sm:$0xff] }
  0xbf   : > { %v601_v24 = vrot.slane %v595_v17, 7  ;;  %v610_v25 = vrot.slane %v595_v17, 1  ;;  %v638_v35 = vmul.f32 %v632_v18, %v595_v17  ;;  %v549_v3 = vadd.f32 1.0, %v1355_v1  ;;  %v752_v17 = vld [vmem:[#allocation2 + $0x10] sm:$0xff] }
  0xc0   : > { %v602_v28 = vrot.slane %v596_v21, 7  ;;  %v611_v29 = vrot.slane %v596_v21, 1  ;;  %v639_v39 = vmul.f32 %v633_v26, %v596_v21  ;;  %777 = vmatpush.msrb.mxu1 %v758_v6  ;;  %v750_v21 = vld [vmem:[#allocation2] sm:$0xff] }
  0xc1   : > { %v606_v31 = vsel %vm600_vm9, %v601_v24, 0.0  ;;  %v615_v32 = vsel %vm609_vm10, %v610_v25, 0.0  ;;  %1356 = vrcp.f32 %v549_v3  ;;  %vm585_vm11 = vweird.f32 %v549_v3 }
  0xc2   : > { %v607_v36 = vsel %vm600_vm9, %v602_v28, 0.0  ;;  %v626_v37 = vmul.f32 %v620_v22, %v606_v31  ;;  %v616_v38 = vsel %vm609_vm10, %v611_v29, 0.0  ;;  %v653_v42 = vmul.f32 %v647_v30, %v615_v32  ;;  %778 = vmatpush.msrb.mxu1 %v757_v7 }
  0xc3   : > { %v627_v40 = vmul.f32 %v621_v27, %v607_v36  ;;  %v654_v45 = vmul.f32 %v648_v34, %v616_v38  ;;  %v591_v24 = vand.u32 2147483648, %v549_v3  ;;  %v589_v26 = vand.u32 2147483647, %v549_v3 }
  0xc4   : > { %v641_v41 = vadd.f32 %v638_v35, %v626_v37  ;;  %779 = vmatpush.msrb.mxu1 %v756_v9  ;;  %v634_v32 = vperm.slane %v1767_v8, 2  ;;  %v622_v37 = vperm.slane %v1774_v14, 2  ;;  %v855_v8 = vld [vmem:[%s1965_s11 + $0x18] sm:$0xff]  ;;  %v854_v14 = vld [vmem:[%s1965_s11 + $0x10] sm:$0xff] }
  0xc5   : > { %v642_v44 = vadd.f32 %v639_v39, %v627_v40  ;;  %v592_v27 = vor.u32 1.1754944e-38, %v591_v24  ;;  %vm590_vm14 = vcmp.eq.f32.partialorder %v589_v26, 8.507059e+37  ;;  %v649_v39 = vperm.slane %v1781_v20, 2  ;;  %964 = vmatpush.msra.mxu0 %v855_v8  ;;  %v852_v20 = vld [vmem:[%s1965_s11] sm:$0xff]  ;;  %v924_v26 = vld [vmem:[%s1965_s11 + $0x30] sm:$0xff] }
  0xc6   : > { %v656_v47 = vadd.f32 %v653_v42, %v641_v41  ;;  %780 = vmatpush.msrb.mxu1 %v755_v12 }
  0xc7   : > { %v657_v48 = vadd.f32 %v654_v45, %v642_v44  ;;  %v1357_v10 = vpop.eup %1356  ;;  %v663_v44 = vperm.slane %v1797_v33, 2  ;;  %965 = vmatpush.msra.mxu0 %v854_v14  ;;  %v1133_v14 = vld [vmem:[%s1965_s11 + $0x78] sm:$0xff] }
  0xc8   : > { %v667_v49 = vadd.f32 %v661_v43, %v656_v47  ;;  %v581_v15 = vmul.f32 %v1357_v10, %v549_v3  ;;  %781 = vmatpush.msrb.mxu1 %v754_v13  ;;  %vm586_vm12 = vweird.f32 %v1357_v10 }
  0xc9   : > { %v668_v50 = vadd.f32 %v662_v46, %v657_v48  ;;  %vm587_vm13 = vmor %vm585_vm11, %vm586_vm12  ;;  %966 = vmatpush.msra.mxu0 %v853_v11  ;;  %v1132_v11 = vld [vmem:[%s1965_s11 + $0x70] sm:$0xff] }
  0xca   : > { %706 = vmatmul.f32.vlgmr.msra.gmra.mxu3 %v667_v49  ;;  %v582_v18 = vsub.f32 1.0, %v581_v15  ;;  %782 = vmatpush.msrb.mxu1 %v753_v16 }
  0xcb   : > { %746 = vmatmul.f32.vlgmr.msrb.gmra.mxu0 %v668_v50  ;;  %v1344_v50 = vld [vmem:[%s1964_s10] ss:$0 sm:$0xff] }
  0xcc   : > { %783 = vmatpush.msrb.mxu1 %v752_v17  ;;  %v583_v22 = vmul.f32 %v1357_v10, %v582_v18  ;;  %967 = vmatpush.msra.mxu0 %v852_v20  ;;  %v1131_v20 = vld [vmem:[%s1965_s11 + $0x68] sm:$0xff] }
  0xce   : > { %784 = vmatpush.msrb.mxu1 %v751_v19  ;;  %v584_v25 = vadd.f32 %v1357_v10, %v583_v22 }
  0xd0   : > { %785 = vmatpush.msrb.mxu1 %v750_v21  ;;  %v588_v28 = vsel %vm587_vm13, %v1357_v10, %v584_v25  ;;  %v925_v25 = vld [vmem:[%s1965_s11 + $0x38] sm:$0xff] }
  0xd1   : > { %v593_v29 = vsel %vm590_vm14, %v592_v27, %v588_v28  ;;  %941 = vmatpush.msrb.mxu3 %v925_v25  ;;  %v923_v27 = vld [vmem:[%s1965_s11 + $0x28] sm:$0xff]  ;;  %v922_v28 = vld [vmem:[%s1965_s11 + $0x20] sm:$0xff] }
  0xd2   : > { %v597_v30 = vmul.f32 %v593_v29, %v1810_v54  ;;  %v1040_v29 = vld [vmem:[%s1965_s11 + $0x58] sm:$0xff] }
  0xd3   : > { %942 = vmatpush.msrb.mxu3 %v924_v26 }
  0xd4   : > { %v603_v31 = vrot.slane %v597_v30, 7  ;;  %v612_v35 = vrot.slane %v597_v30, 1  ;;  %v640_v36 = vmul.f32 %v634_v32, %v597_v30  ;;  %v1039_v30 = vld [vmem:[%s1965_s11 + $0x50] sm:$0xff]  ;;  %v1037_v32 = vld [vmem:[%s1965_s11 + $0x40] sm:$0xff] }
  0xd5   : > { %943 = vmatpush.msrb.mxu3 %v923_v27 }
  0xd6   : > { %v608_v34 = vsel %vm600_vm9, %v603_v31, 0.0  ;;  %v617_v40 = vsel %vm609_vm10, %v612_v35, 0.0  ;;  %v1038_v31 = vld [vmem:[%s1965_s11 + $0x48] sm:$0xff] }
  0xd7   : > { %v628_v38 = vmul.f32 %v622_v37, %v608_v34  ;;  %v655_v42 = vmul.f32 %v649_v39, %v617_v40  ;;  %944 = vmatpush.msrb.mxu3 %v922_v28 }
  0xd9   : > { %v643_v41 = vadd.f32 %v640_v36, %v628_v38  ;;  %1056 = vmatpush.msra.mxu3 %v1040_v29 }
  0xdb   : > { %v658_v43 = vadd.f32 %v655_v42, %v643_v41  ;;  %1057 = vmatpush.msra.mxu3 %v1039_v30 }
  0xdd   : > { %v669_v45 = vadd.f32 %v663_v44, %v658_v43  ;;  %1058 = vmatpush.msra.mxu3 %v1038_v31 }
  0xdf   : > { %786 = vmatmul.f32.vlgmr.msrb.gmra.mxu1 %v669_v45  ;;  %1059 = vmatpush.msra.mxu3 %v1037_v32 }
 0x148   : > { %v747_v58 = vpop.f32.mrf.mxu0 }
 0x149   : > { %v1813_v59 = vadd.f32 %v1342_v53, %v747_v58 }
 0x14b   : > { %974 = vrot.lane.b32.xlu2 %v1813_v59, %s1475_s16  ;;  %1267 = vmatpush.xpose.msk.msrb.mxu2 %vm474_vm0, %v1813_v59 }
 0x14d   : > { %v707_v62 = vpop.f32.mrf.mxu3 }
 0x14e   : > { %v708_v0 = vadd.f32 %v1343_v23, %v707_v62 }
 0x150   : > { %v790_v2 = vmul.f32 0.17677669, %v708_v0 }
 0x152   : > { %856 = vrot.lane.b32.xlu1 %v790_v2, %s1476_s21  ;;  %1268 = vmatmul.msk.f32.vlgmr.msrb.gmra.mxu2 %vm474_vm0, %v790_v2 }
 0x153   : > { %972 = vrot.lane.b32.xlu2 %v790_v2, %s1475_s16 }
 0x15b   : > { %1067 = vrot.lane.b32.xlu2 %v1813_v59, %s1477_s14 }
 0x15c   : > { %v787_v51 = vpop.f32.mrf.mxu1 }
 0x15d   : > { %v788_v52 = vadd.f32 %v1344_v50, %v787_v51 }
 0x15f   : > { %845 = vmatpush.msra.mxu2 %v788_v52 }
 0x163   : > { %1065 = vrot.lane.b32.xlu2 %v790_v2, %s1477_s14 }
 0x1a5   : > { %v975_v33 = vpop.permute.xlu2 %974 }
 0x1a6   : > { %1275 = vmatpush.xpose.msk.msra.mxu1 %vm474_vm0, %v975_v33  ;;  %v1130_v33 = vld [vmem:[%s1965_s11 + $0x60] sm:$0xff] }
 0x1ad   : > { %v973_v46 = vpop.permute.xlu2 %972 }
 0x1ae   : > { %1276 = vmatmul.msk.f32.vlgmr.msra.gmra.mxu1 %vm474_vm0, %v973_v46 }
 0x1b5   : > { %v1068_v47 = vpop.permute.xlu2 %1067 }
 0x1b6   : > { %1279 = vmatpush.xpose.msk.msrb.mxu0 %vm474_vm0, %v1068_v47 }
 0x1bd   : > { %v1066_v61 = vpop.permute.xlu2 %1065 }
 0x1c4   : > { %v857_v23 = vpop.permute.xlu1 %856 }
 0x1d5   : > { %v814_v48 = vpop.f32.mrf.mxu2 }
 0x1d6   : > { %v818_v49 = vsel %vm817_vm15, %v814_v48, -inf }
 0x1d7   : > { %819 = vmax.xlane.f32.xlu0 %v818_v49 }
 0x1eb   : > { %858 = vrot.lane.b32.xlu0 %v1813_v59, %s1476_s21 }
 0x22b   : > { %v997_v53 = vpop.f32.mrf.mxu1 }
 0x22c   : > { %v1000_v54 = vsel %vm817_vm15, %v997_v53, -inf }
 0x22d   : > { %1001 = vmax.xlane.f32.xlu2 %v1000_v54  ;;  %v1345_v54 = vld [vmem:[%s1966_s12] ss:$0 sm:$0xff] }
 0x245   : > { %1009 = vrot.lane.b32.xlu2 %v788_v52, %s1475_s16  ;;  %s446_s16 = sand.u32 1, %s1462_s26  }
 0x24a   : > { %v820_v55 = vpop.xlane.xlu0 %819 }
 0x24b   : > { %v821_v56 = vsub.f32 %v814_v48, %v820_v55 }
 0x24d   : > { %v822_v57 = vmul.f32 1.442695, %v821_v56 }
 0x24f   : > { %1358 = vpow2.f32 %v822_v57 }
 0x255   : > { %v1359_v58 = vpop.eup %1358 }
 0x256   : > { %1269 = vmatmul.msk.f32.vlgmr.msra.gmra.mxu2 %vm817_vm15, %v1359_v58  ;;  %v824_v59 = vsel %vm817_vm15, %v1359_v58, 0.0 }
 0x257   : > { %825 = vadd.xlane.f32.xlu1 %v824_v59 }
 0x25d   : > { %v859_v60 = vpop.permute.xlu0 %858 }
 0x25e   : > { %1270 = vmatpush.xpose.msk.msrb.mxu2 %vm474_vm0, %v859_v60 }
 0x261   : > { %1271 = vmatmul.msk.f32.vlgmr.msrb.gmra.mxu2 %vm474_vm0, %v857_v23 }
 0x270   : > { %894 = vrot.lane.b32.xlu1 %v788_v52, %s1476_s21  ;;  %s1257_s21 = sshll.u32 %s446_s16, 3 }
 0x271   : > { %s448_s15 = scalar_lea.vmem [#allocation5], %s1257_s21  ;;  %s1424_s21 = scalar_lea.hbm %s1967_s13, 16 }
 0x272   : > { %s1177_s27 = sshll.u32 %s448_s15, 4  ;;  %s1178_s27 = int_to_ptr.vmem [resolvable:$true] %s1177_s27 }
 0x278   : > { %1102 = vrot.lane.b32.xlu1 %v788_v52, %s1477_s14  ;;  %s1284_s14 = sshll.u32 %s1569_s29, 3  ;;  %s1165_s29 = scalar_lea.sflag [#allocation4], %s446_s16 }
 0x279   : > { %s1175_s22 = scalar_lea.hbm %s1967_s13, %s1284_s14 }
 0x27a   : > { %s1179_s20 = sshll.u32 %s1175_s22, 4  ;;  %s1180_s20 = int_to_ptr.hbm [resolvable:$true] %s1179_s20 }
 0x27b   : > { %s1418_s23 = sshra.s32 %s1180_s20, 4  ;;  %s1419_s23 = int_to_ptr.hbm [resolvable:$true] %s1418_s23 }
 0x27c   : > { %s1420_s14 = scalar_lea.hbm %s1419_s23, 8  ;;  %p1425_p3 = scmp.lt.s32.totalorder %s1419_s23, %s1967_s13 }
 0x27d   : > { %p1421_p0 = scmp.ne.s32.totalorder %s1419_s23, %s1420_s14  ;;  %p1426_p4 = scmp.lt.s32.totalorder %s1424_s21, %s1420_s14 }
 0x27f   : > { %p1422_p1 = pnand %p1421_p0, %p1586_p5  ;;  %p1427_p7 = por %p1426_p4, %p1425_p3 }
 0x281   : > { %p1423_p2 = pneg %p1422_p1 }
 0x283   : > { %p1428_p8 = pnand %p1427_p7, %p1423_p2 }
 0x2a0   : > { %v1002_v62 = vpop.xlane.xlu2 %1001 }
 0x2a1   : > { %v1003_v63 = vsub.f32 %v997_v53, %v1002_v62 }
 0x2a3   : > { %v1004_v0 = vmul.f32 1.442695, %v1003_v63 }
 0x2a5   : > { %1360 = vpow2.f32 %v1004_v0 }
 0x2a8   : > { %v1010_v9 = vpop.permute.xlu2 %1009 }
 0x2ab   : > { %v1361_v1 = vpop.eup %1360 }
 0x2ac   : > { %v1006_v2 = vsel %vm817_vm15, %v1361_v1, 0.0 }
 0x2ad   : > { %1007 = vadd.xlane.f32.xlu1 %v1006_v2 }
 0x2ca   : > { %v826_v3 = vpop.xlane.xlu1 %825 }
 0x2cb   : > { %1362 = vrcp.f32 %v826_v3 }
 0x2d1   : > { %v1363_v4 = vpop.eup %1362 }
 0x2d9   : > { %v847_v5 = vpop.f32.mrf.mxu2 }
 0x2da   : > { %v851_v6 = vmul.f32 %v1363_v4, %v847_v5 }
 0x2dc   : > { %1274 = vmatmul.msk.f32.vlgmr.msra.gmra.mxu0 %vm474_vm0, %v851_v6 }
 0x2e2   : > { %v895_v7 = vpop.permute.xlu1 %894 }
 0x2e3   : > { %915 = vmatpush.msra.mxu2 %v895_v7 }
 0x2e4   : > { %v881_v10 = vpop.f32.mrf.mxu2  ;;  %1280 = vmatmul.msk.f32.vlgmr.msrb.gmra.mxu0 %vm474_vm0, %v1066_v61 }
 0x2e5   : > { %1030 = vmatpush.msrb.mxu2 %v1010_v9  ;;  %v884_v12 = vsel %vm817_vm15, %v881_v10, -inf }
 0x2e6   : > { %885 = vmax.xlane.f32.xlu0 %v884_v12 }
 0x2ea   : > { %v1103_v13 = vpop.permute.xlu1 %1102 }
 0x2eb   : > { %1123 = vmatpush.msrb.mxu1 %v1103_v13 }
 0x320   : > { %v1008_v40 = vpop.xlane.xlu1 %1007 }
 0x359   : > { %v1870_v15 = vpop.f32.mrf.mxu0  ;;  %v886_v16 = vpop.xlane.xlu0 %885 }
 0x35a   : > { %v887_v17 = vsub.f32 %v881_v10, %v886_v16 }
 0x35c   : > { %v888_v18 = vmul.f32 1.442695, %v887_v17 }
 0x35e   : > { %1364 = vpow2.f32 %v888_v18 }
 0x361   : > { %v1090_v19 = vpop.f32.mrf.mxu0 }
 0x362   : > { %v1093_v21 = vsel %vm817_vm15, %v1090_v19, -inf }
 0x363   : > { %1094 = vmax.xlane.f32.xlu0 %v1093_v21 }
 0x364   : > { %v1365_v22 = vpop.eup %1364 }
 0x365   : > { %1272 = vmatmul.msk.f32.vlgmr.msra.gmra.mxu2 %vm817_vm15, %v1365_v22  ;;  %v890_v24 = vsel %vm817_vm15, %v1365_v22, 0.0 }
 0x366   : > { %1149 = vmatpush.msra.mxu2 %v1133_v14 }
 0x368   : > { %1150 = vmatpush.msra.mxu2 %v1132_v11 }
 0x36a   : > { %1151 = vmatpush.msra.mxu2 %v1131_v20 }
 0x36b   : > { %891 = vadd.xlane.f32.xlu0 %v890_v24 }
 0x36c   : > { %1152 = vmatpush.msra.mxu2 %v1130_v33 }
 0x36d   : > { %1277 = vmatmul.msk.f32.vlgmr.msrb.gmra.mxu2 %vm817_vm15, %v1361_v1 }
 0x3d6   : > { %v1095_v34 = vpop.xlane.xlu0 %1094 }
 0x3d7   : > { %v1096_v35 = vsub.f32 %v1090_v19, %v1095_v34 }
 0x3d9   : > { %v1097_v36 = vmul.f32 1.442695, %v1096_v35 }
 0x3db   : > { %1366 = vpow2.f32 %v1097_v36 }
 0x3de   : > { %v892_v37 = vpop.xlane.xlu0 %891 }
 0x3df   : > { %1368 = vrcp.f32 %v892_v37 }
 0x3e0   : > { %1370 = vrcp.f32 %v1008_v40 }
 0x3e1   : > { %v1367_v38 = vpop.eup %1366 }
 0x3e2   : > { %1281 = vmatmul.msk.f32.vlgmr.msrb.gmra.mxu1 %vm817_vm15, %v1367_v38  ;;  %v1099_v39 = vsel %vm817_vm15, %v1367_v38, 0.0 }
 0x3e3   : > { %1100 = vadd.xlane.f32.xlu0 %v1099_v39 }
 0x3e5   : > { %v1369_v41 = vpop.eup %1368 }
 0x3e6   : > { %v1371_v44 = vpop.eup %1370 }
 0x3e8   : > { %v917_v42 = vpop.f32.mrf.mxu2 }
 0x3e9   : > { %v921_v43 = vmul.f32 %v1369_v41, %v917_v42 }
 0x3eb   : > { %1273 = vmatmul.msk.f32.vlgmr.msrb.gmra.mxu3 %vm474_vm0, %v921_v43 }
 0x3f0   : > { %v1032_v45 = vpop.f32.mrf.mxu2 }
 0x3f1   : > { %v1036_v8 = vmul.f32 %v1371_v44, %v1032_v45 }
 0x3f3   : > { %1278 = vmatmul.msk.f32.vlgmr.msra.gmra.mxu3 %vm474_vm0, %v1036_v8 }
 0x456   : > { %v1101_v46 = vpop.xlane.xlu0 %1100 }
 0x457   : > { %1372 = vrcp.f32 %v1101_v46 }
 0x45d   : > { %v1373_v47 = vpop.eup %1372 }
 0x45f   : > { %v1125_v48 = vpop.f32.mrf.mxu1 }
 0x460   : > { %v1129_v49 = vmul.f32 %v1373_v47, %v1125_v48 }
 0x462   : > { %1282 = vmatmul.msk.f32.vlgmr.msra.gmra.mxu2 %vm474_vm0, %v1129_v49 }
 0x46e   : > { %v946_v50 = vpop.f32.mrf.mxu3 }
 0x46f   : > { %v970_v52 = vadd.f32 %v1870_v15, %v946_v50 }
 0x476   : > { %v1061_v51 = vpop.f32.mrf.mxu3 }
 0x477   : > { %v1064_v53 = vadd.f32 %v1061_v51, %v970_v52 }
 0x4e5   : > { %v1154_v55 = vpop.f32.mrf.mxu2 }
 0x4e6   : > { %v1157_v56 = vadd.f32 %v1154_v55, %v1064_v53 }
 0x4e8   : > { %v1162_v57 = vadd.f32 %v1345_v54, %v1157_v56 }
 0x4ea   : > { %1163 = vst.msk [vmem:[%s448_s15] sm:$0xff] %vm474_vm0, %v1162_v57 }
 0x4eb   : > { %1431 = shalt.err (!%p1428_p8)
}
 0x4ec   : > { %1291 = dma.vmem_to_hbm [thread:$0]  (%p1586_p5), %s1178_s27, 128, %s1180_s20, %s1165_s29  }
 0x4ed PF: > { %p1303_p9 = scmp.ge.s32.totalorder %s1470_s28, 2  ;;  %s1191_s16 = sand.u32 1, %s1458_s25  }
 0x4ee   : > { %s1192_s30 = scalar_lea.sflag [#allocation4], %s1191_s16 }
 0x4ef   : > { %p1298_p10 = pnand %p1303_p9, %p1590_p6 }
 0x4f1   : > { %p1299_p11 = pneg %p1298_p10 }
 0x4f3   : > { %1453 = dma.done.wait (%p1299_p11), %s1192_s30, 128  }
 0x4f4   : > { %1455 = vsyncadd (%p1299_p11), %s1192_s30, 4294967168  ;;  %s1978_s28 = sld [smem:[#allocation9_spill]]  ;;  %s1981_s25 = smov %s1462_s26 }
 0x4f5   : > { %s1979_s15 = sld [smem:[#allocation8_spill]] }
 0x4f6   : > { %s1980_s27 = sld [smem:[#allocation10_spill]] }
 0x4fa   : > { %p24_p12 = scmp.ge.s32.totalorder %s1978_s28, 4  }
 0x4fb   : > { %s1982_s26 = smov %s1979_s15 }
 0x4fc   :  { %26 = sbr.rel (!%p24_p12) target bundleno = 6 (0x6), region = 114 }
 0x501   :  { %1198 = vsyncpa [#allocation3], 1 }
 0x502   :  { %1200 = vsyncpa [#allocation3 + $0x1], 1 }
 0x503   :  { %1201 = vsyncpa [#allocation4], 1 }
 0x504   :  { %1203 = vsyncpa [#allocation4 + $0x1], 1 }

</bundles_post_ra>
